<compile_context>
chip_gen: v7x
topology: tpu7x:2x2x1
jax: 0.10.0
libtpu: 0.0.40
codegen_flags: <defaults>
</compile_context>

<pallas_src>
import functools

import jax
import jax.numpy as jnp
from jax import lax
from jax.experimental import pallas as pl
from jax.experimental.pallas import tpu as pltpu

_LANES = 128


def _round_up(x, m):
    return ((x + m - 1) // m) * m


def _modified_huber_kernel(pred_ref, targ_ref, out_ref, *,
                           tiles_per_core, tiles_total, tail_valid, has_excess,
                           neg_mult, alpha, beta, epsilon, inv_gamma,
                           w_pos, w_neg, binary_fast_path):
    c = pl.program_id(0)             # parallel (core) axis
    i = pl.program_id(1)             # sequential row-tile axis within a core
    g = c * tiles_per_core + i       # logical global tile index

    # Per-core (8,128) partial-sum block, VMEM-resident across the inner axis.
    @pl.when(i == 0)
    def _init():
        out_ref[...] = jnp.zeros_like(out_ref)

    def _accumulate(apply_tail_mask):
        p = pred_ref[...].astype(jnp.float32)
        t = targ_ref[...].astype(jnp.float32)

        if binary_fast_path:
            # Exact for targets in {+1,-1}: constants folded at trace time.
            w = jnp.where(t > 0.0, jnp.float32(w_pos), jnp.float32(w_neg))
        else:
            # Sequential in-place weight adjustment mirrored with jnp.where
            # (order matters exactly as in the PyTorch code).
            w = jnp.where(t < 1.0, t * neg_mult, t)   # w[w < 1]  *= -(E-1)
            w = jnp.where(w == 1.0, w * alpha, w)     # w[w == 1] *= alpha
            w = jnp.where(w > 1.0, w * beta, w)       # w[w > 1]  *= beta

        tp = t * p
        hinge = jnp.maximum(1.0 - tp, 0.0)
        loss = jnp.where(tp > -1.0, hinge * hinge, -4.0 * tp)
        # .pow(1/gamma) via EUP exp/log; base > 0 for targets in {+1,-1}.
        loss = jnp.exp(jnp.log((loss + epsilon) * w) * inv_gamma)

        if apply_tail_mask:
            # Only emitted / executed on the final global tile.
            tr, lanes = loss.shape
            rid = lax.broadcasted_iota(jnp.int32, (tr, lanes), 0)
            lid = lax.broadcasted_iota(jnp.int32, (tr, lanes), 1)
            loss = jnp.where(rid * lanes + lid < tail_valid, loss, 0.0)

        # Sublane-wise vector accumulation; no cross-lane reduce in the kernel.
        out_ref[...] += loss.reshape(-1, 8, _LANES).sum(axis=0)

    last = tiles_total - 1
    if tail_valid is not None:
        # Padding exists: mask ops only on the last valid tile; excess tiles
        # (g > last, only possible with the 2-core split) are skipped entirely.
        @pl.when(g == last)
        def _tail():
            _accumulate(True)

        if tiles_total > 1:
            @pl.when(g < last)
            def _body():
                _accumulate(False)
    elif has_excess:
        @pl.when(g < tiles_total)
        def _body():
            _accumulate(False)
    else:
        _accumulate(False)


def modified_huber_loss(predictions, targets, *,
                        epsilon=1e-10, gamma=0.75, penalties=(0.3, 0.7),
                        reduction='mean', tile_rows=4096, num_cores=2,
                        assume_binary_targets=False):
    assert predictions.ndim == 2 and predictions.shape == targets.shape
    batch, elements = predictions.shape
    n = batch * elements

    # Minimum sublane multiple of the narrower input dtype (f32->8, bf16->16, int8->32).
    min_item = min(predictions.dtype.itemsize, targets.dtype.itemsize)
    min_sublane = max(8, 32 // min_item)

    rows = -(-n // _LANES)                 # rows of the lane-dense (rows, 128) slab
    pad = rows * _LANES - n                # <= 127 elements; 0 when n % 128 == 0

    tr = max(min_sublane, min(int(tile_rows), 8192, _round_up(rows, min_sublane)))
    tr = _round_up(tr, min_sublane)

    tiles_total = -(-rows // tr)
    cores = 1 if tiles_total < 2 else max(1, int(num_cores))
    tiles_per_core = -(-tiles_total // cores)
    has_excess = cores * tiles_per_core > tiles_total

    covered = tiles_total * tr * _LANES
    tail_valid = None
    if covered != n:
        # All padded / out-of-range elements live in the last global tile.
        tail_valid = n - (tiles_total - 1) * tr * _LANES

    p_flat = predictions.reshape(-1)
    t_flat = targets.reshape(-1)
    if pad:
        # Pad only up to the next 128-lane multiple; masked exactly in-kernel.
        p_flat = jnp.pad(p_flat, (0, pad), constant_values=1)
        t_flat = jnp.pad(t_flat, (0, pad), constant_values=1)
    p2 = p_flat.reshape(rows, _LANES)
    t2 = t_flat.reshape(rows, _LANES)

    alpha, beta = float(penalties[0]), float(penalties[1])
    neg_mult = -(float(elements) - 1.0)

    def _weight_chain(v):
        # Trace-time emulation of the sequential adjustment for a scalar target.
        if v < 1.0:
            v = v * neg_mult
        if v == 1.0:
            v = v * alpha
        if v > 1.0:
            v = v * beta
        return v

    w_pos, w_neg = _weight_chain(1.0), _weight_chain(-1.0)

    if reduction == 'mean':
        scale = 1.0 / (float(n) * float(batch))        # loss.mean() / batch
    elif reduction == 'sum':
        scale = 1.0 / float(batch)                     # loss.sum()  / batch
    else:
        raise ValueError(f"unknown reduction: {reduction!r}")

    kernel = functools.partial(
        _modified_huber_kernel,
        tiles_per_core=tiles_per_core, tiles_total=tiles_total,
        tail_valid=tail_valid, has_excess=has_excess,
        neg_mult=neg_mult, alpha=alpha, beta=beta,
        epsilon=float(epsilon), inv_gamma=1.0 / float(gamma),
        w_pos=w_pos, w_neg=w_neg,
        binary_fast_path=bool(assume_binary_targets),
    )

    if has_excess:
        def row_block(c, i):
            # Clamp so excess iterations (compute-skipped) never DMA out of range.
            return (jnp.minimum(c * tiles_per_core + i, tiles_total - 1), 0)
    else:
        def row_block(c, i):
            return (c * tiles_per_core + i, 0)

    dbl_buf_bytes = 2 * tr * _LANES * (p2.dtype.itemsize + t2.dtype.itemsize)
    vmem_limit = int(min(56 * 1024 * 1024, max(32 * 1024 * 1024, 2 * dbl_buf_bytes)))

    bytes_in = p2.size * p2.dtype.itemsize + t2.size * t2.dtype.itemsize
    cost = pl.CostEstimate(flops=14 * n, transcendentals=2 * n,
                           bytes_accessed=bytes_in + cores * 8 * _LANES * 4)

    partials = pl.pallas_call(
        kernel,
        out_shape=jax.ShapeDtypeStruct((cores * 8, _LANES), jnp.float32),
        grid=(cores, tiles_per_core),
        in_specs=[
            pl.BlockSpec((tr, _LANES), row_block),
            pl.BlockSpec((tr, _LANES), row_block),
        ],
        out_specs=pl.BlockSpec((8, _LANES), lambda c, i: (c, 0)),
        compiler_params=pltpu.CompilerParams(
            dimension_semantics=("parallel", "arbitrary"),
            vmem_limit_bytes=vmem_limit),
        cost_estimate=cost,
    )(p2, t2)

    # Tiny final cross-lane reduce + scale of the per-core partials.
    return jnp.sum(partials) * scale


def _reference(predictions, targets, *, epsilon=1e-10, gamma=0.75,
               penalties=(0.3, 0.7), reduction='mean'):
    # Pure-JAX reference mirroring the PyTorch forward.
    alpha, beta = penalties
    p = predictions.astype(jnp.float32)
    t = targets.astype(jnp.float32)
    E = predictions.shape[-1]
    w = t
    w = jnp.where(w < 1.0, w * (-(E - 1.0)), w)
    w = jnp.where(w == 1.0, w * alpha, w)
    w = jnp.where(w > 1.0, w * beta, w)
    tp = t * p
    loss = jnp.where(tp > -1.0, jnp.maximum(1.0 - tp, 0.0) ** 2, -4.0 * tp)
    loss = ((loss + epsilon) * w) ** (1.0 / gamma)
    if reduction == 'mean':
        return loss.mean() / predictions.shape[0]
    return loss.sum() / predictions.shape[0]


if __name__ == "__main__":
    key = jax.random.PRNGKey(0)
    kp, kt, kp2, kt2, kp3, kt3, kp4, kt4 = jax.random.split(key, 8)

    # Shapes implied by the module: [batch, prob_array]
    batch, elements = 2, 16
    preds = jax.random.normal(kp, (batch, elements), dtype=jnp.float32)
    targs = jnp.where(jax.random.bernoulli(kt, 0.5, (batch, elements)),
                      1.0, -1.0).astype(jnp.float32)

    out = modified_huber_loss(preds, targs)
    jax.block_until_ready(out)
    ref = _reference(preds, targs)
    assert jnp.allclose(out, ref, rtol=1e-4, atol=1e-6), (out, ref)

    # 'sum' reduction path.
    out_s = modified_huber_loss(preds, targs, reduction='sum')
    ref_s = _reference(preds, targs, reduction='sum')
    assert jnp.allclose(out_s, ref_s, rtol=1e-4, atol=1e-5), (out_s, ref_s)

    # Opt-in binary fast path (exact for +/-1 targets).
    out_f = modified_huber_loss(preds, targs, assume_binary_targets=True)
    assert jnp.allclose(out_f, ref, rtol=1e-4, atol=1e-6), (out_f, ref)

    # Multi-tile + 2-core split, no tail mask (n is an exact tile multiple).
    p2 = jax.random.normal(kp2, (4, 512), dtype=jnp.float32)
    t2 = jnp.where(jax.random.bernoulli(kt2, 0.5, (4, 512)), 1.0, -1.0).astype(jnp.float32)
    out2 = modified_huber_loss(p2, t2, tile_rows=8)
    ref2 = _reference(p2, t2)
    assert jnp.allclose(out2, ref2, rtol=1e-4, atol=1e-6), (out2, ref2)

    # Odd tile count -> one excess (skipped, clamped-DMA) tile on the second core.
    p3 = jax.random.normal(kp3, (3, 1024), dtype=jnp.float32)
    t3 = jnp.where(jax.random.bernoulli(kt3, 0.5, (3, 1024)), 1.0, -1.0).astype(jnp.float32)
    out3 = modified_huber_loss(p3, t3, tile_rows=8)
    ref3 = _reference(p3, t3)
    assert jnp.allclose(out3, ref3, rtol=1e-4, atol=1e-6), (out3, ref3)

    # bf16 inputs: sublane multiple of 16 for the tile + tail mask (n % 128 != 0).
    p4 = jax.random.normal(kp4, (4, 500), dtype=jnp.bfloat16)
    t4 = jnp.where(jax.random.bernoulli(kt4, 0.5, (4, 500)), 1.0, -1.0).astype(jnp.bfloat16)
    out4 = modified_huber_loss(p4, t4, tile_rows=8)
    ref4 = _reference(p4, t4)
    assert jnp.allclose(out4, ref4, rtol=2e-3, atol=1e-5), (out4, ref4)

    jax.block_until_ready((out, out_s, out_f, out2, out3, out4))
    print("KERNEL_OK")
</pallas_src>

<mosaic_0001>
module attributes {stable_mosaic.version = 11 : i64} {
  func.func @_modified_huber_kernel(%arg0: i32, %arg1: i32, %arg2: memref<8x128xf32, #tpu.memory_space<vmem>>, %arg3: memref<8x128xf32, #tpu.memory_space<vmem>>, %arg4: memref<8x128xf32, #tpu.memory_space<vmem>>) attributes {dimension_semantics = [#tpu.dimension_semantics<parallel>, #tpu.dimension_semantics<arbitrary>], iteration_bounds = array<i64: 1, 1>, scalar_prefetch = 0 : i64, scratch_operands = 0 : i64, tpu.core_type = #tpu.core_type<tc>, window_params = [{transform_indices = @transform_0, window_bounds = array<i64: 8, 128>}, {transform_indices = @transform_1, window_bounds = array<i64: 8, 128>}, {transform_indices = @transform_2, window_bounds = array<i64: 8, 128>}]} {
    %c1_i32 = arith.constant 1 : i32
    %0 = arith.muli %arg0, %c1_i32 : i32
    %1 = arith.addi %0, %arg1 : i32
    %c0_i32 = arith.constant 0 : i32
    %2 = arith.cmpi eq, %arg1, %c0_i32 : i32
    %3 = arith.extui %2 : i1 to i32
    %c0_i32_0 = arith.constant 0 : i32
    %4 = arith.cmpi ne, %3, %c0_i32_0 : i32
    scf.if %4 {
      %cst = arith.constant 0.000000e+00 : f32
      %8 = vector.broadcast %cst : f32 to vector<8x128xf32>
      %c0 = arith.constant 0 : index
      %c0_3 = arith.constant 0 : index
      %9 = vector.load %arg4[%c0, %c0_3] : memref<8x128xf32, #tpu.memory_space<vmem>>, vector<8x128xf32>
      tpu.vector_store %arg4[%c0, %c0_3], %8 {strides = array<i32>} : memref<8x128xf32, #tpu.memory_space<vmem>>, vector<8x128xf32>,
    } else {
    }
    %c0_i32_1 = arith.constant 0 : i32
    %5 = arith.cmpi eq, %1, %c0_i32_1 : i32
    %6 = arith.extui %5 : i1 to i32
    %c0_i32_2 = arith.constant 0 : i32
    %7 = arith.cmpi ne, %6, %c0_i32_2 : i32
    scf.if %7 {
      %c0 = arith.constant 0 : index
      %c0_3 = arith.constant 0 : index
      %8 = vector.load %arg2[%c0, %c0_3] : memref<8x128xf32, #tpu.memory_space<vmem>>, vector<8x128xf32>
      %c0_4 = arith.constant 0 : index
      %c0_5 = arith.constant 0 : index
      %9 = vector.load %arg3[%c0_4, %c0_5] : memref<8x128xf32, #tpu.memory_space<vmem>>, vector<8x128xf32>
      %cst = arith.constant 1.000000e+00 : f32
      %10 = vector.broadcast %cst : f32 to vector<8x128xf32>
      %11 = arith.cmpf olt, %9, %10 : vector<8x128xf32>
      %cst_6 = arith.constant -1.500000e+01 : f32
      %12 = vector.broadcast %cst_6 : f32 to vector<8x128xf32>
      %13 = arith.mulf %9, %12 : vector<8x128xf32>
      %14 = arith.select %11, %13, %9 : vector<8x128xi1>, vector<8x128xf32>
      %cst_7 = arith.constant 1.000000e+00 : f32
      %15 = vector.broadcast %cst_7 : f32 to vector<8x128xf32>
      %16 = arith.cmpf oeq, %14, %15 : vector<8x128xf32>
      %cst_8 = arith.constant 3.000000e-01 : f32
      %17 = vector.broadcast %cst_8 : f32 to vector<8x128xf32>
      %18 = arith.mulf %14, %17 : vector<8x128xf32>
      %19 = arith.select %16, %18, %14 : vector<8x128xi1>, vector<8x128xf32>
      %cst_9 = arith.constant 1.000000e+00 : f32
      %20 = vector.broadcast %cst_9 : f32 to vector<8x128xf32>
      %21 = arith.cmpf ogt, %19, %20 : vector<8x128xf32>
      %cst_10 = arith.constant 0.699999988 : f32
      %22 = vector.broadcast %cst_10 : f32 to vector<8x128xf32>
      %23 = arith.mulf %19, %22 : vector<8x128xf32>
      %24 = arith.select %21, %23, %19 : vector<8x128xi1>, vector<8x128xf32>
      %25 = arith.mulf %9, %8 : vector<8x128xf32>
      %cst_11 = arith.constant 1.000000e+00 : f32
      %26 = vector.broadcast %cst_11 : f32 to vector<8x128xf32>
      %27 = arith.subf %26, %25 : vector<8x128xf32>
      %cst_12 = arith.constant 0.000000e+00 : f32
      %28 = vector.broadcast %cst_12 : f32 to vector<8x128xf32>
      %29 = arith.maximumf %27, %28 : vector<8x128xf32>
      %cst_13 = arith.constant -1.000000e+00 : f32
      %30 = vector.broadcast %cst_13 : f32 to vector<8x128xf32>
      %31 = arith.cmpf ogt, %25, %30 : vector<8x128xf32>
      %32 = arith.mulf %29, %29 : vector<8x128xf32>
      %cst_14 = arith.constant -4.000000e+00 : f32
      %33 = vector.broadcast %cst_14 : f32 to vector<8x128xf32>
      %34 = arith.mulf %33, %25 : vector<8x128xf32>
      %35 = arith.select %31, %32, %34 : vector<8x128xi1>, vector<8x128xf32>
      %cst_15 = arith.constant 1.000000e-10 : f32
      %36 = vector.broadcast %cst_15 : f32 to vector<8x128xf32>
      %37 = arith.addf %35, %36 : vector<8x128xf32>
      %38 = arith.mulf %37, %24 : vector<8x128xf32>
      %39 = math.log %38 : vector<8x128xf32>
      %cst_16 = arith.constant 1.33333337 : f32
      %40 = vector.broadcast %cst_16 : f32 to vector<8x128xf32>
      %41 = arith.mulf %39, %40 : vector<8x128xf32>
      %42 = math.exp %41 : vector<8x128xf32>
      %43 = tpu.iota {dimensions = array<i32: 0>} : vector<8x128xi32>
      %44 = tpu.iota {dimensions = array<i32: 1>} : vector<8x128xi32>
      %c128_i32 = arith.constant 128 : i32
      %45 = vector.broadcast %c128_i32 : i32 to vector<8x128xi32>
      %46 = arith.muli %43, %45 : vector<8x128xi32>
      %47 = arith.addi %46, %44 : vector<8x128xi32>
      %c32_i32 = arith.constant 32 : i32
      %48 = vector.broadcast %c32_i32 : i32 to vector<8x128xi32>
      %49 = arith.cmpi slt, %47, %48 : vector<8x128xi32>
      %cst_17 = arith.constant 0.000000e+00 : f32
      %50 = vector.broadcast %cst_17 : f32 to vector<8x128xf32>
      %51 = arith.select %49, %42, %50 : vector<8x128xi1>, vector<8x128xf32>
      %c0_18 = arith.constant 0 : index
      %c0_19 = arith.constant 0 : index
      %52 = vector.load %arg4[%c0_18, %c0_19] : memref<8x128xf32, #tpu.memory_space<vmem>>, vector<8x128xf32>
      %53 = vector.shape_cast %51 : vector<8x128xf32> to vector<1x8x128xf32>
      %cst_20 = arith.constant dense<0.000000e+00> : vector<8x128xf32>
      %54 = vector.multi_reduction <add>, %53, %cst_20 [0] : vector<1x8x128xf32> to vector<8x128xf32>
      %55 = arith.addf %52, %54 : vector<8x128xf32>
      %c0_21 = arith.constant 0 : index
      %c0_22 = arith.constant 0 : index
      %56 = vector.load %arg4[%c0_21, %c0_22] : memref<8x128xf32, #tpu.memory_space<vmem>>, vector<8x128xf32>
      tpu.vector_store %arg4[%c0_21, %c0_22], %55 {strides = array<i32>} : memref<8x128xf32, #tpu.memory_space<vmem>>, vector<8x128xf32>,
    } else {
    }
    return
  }
  func.func @transform_0(%arg0: i32, %arg1: i32) -> (i32, i32) {
    %c1_i32 = arith.constant 1 : i32
    %0 = arith.muli %arg0, %c1_i32 : i32
    %1 = arith.addi %0, %arg1 : i32
    %c0_i32 = arith.constant 0 : i32
    %c0_i32_0 = arith.constant 0 : i32
    return %1, %c0_i32 : i32, i32
  }
  func.func @transform_1(%arg0: i32, %arg1: i32) -> (i32, i32) {
    %c1_i32 = arith.constant 1 : i32
    %0 = arith.muli %arg0, %c1_i32 : i32
    %1 = arith.addi %0, %arg1 : i32
    %c0_i32 = arith.constant 0 : i32
    %c0_i32_0 = arith.constant 0 : i32
    return %1, %c0_i32 : i32, i32
  }
  func.func @transform_2(%arg0: i32, %arg1: i32) -> (i32, i32) {
    %c0_i32 = arith.constant 0 : i32
    %c0_i32_0 = arith.constant 0 : i32
    return %arg0, %c0_i32 : i32, i32
  }
}

</mosaic_0001>

<bundles_post_ra>
// kernel: tpu_custom_call.1
= control target key start
LH: loop header
LB: loop body
LE: loop exit
PB: predicated region body
PF: predicated region fallthrough
CT: control target
= control target key end

     0   :  { %7 = vsyncpa [#allocation3], 0  ;;  %s234_s0 = inlined_call_operand.hbm [shape: f32[1,128], index: 0, kind: input, shape index: {}]   ;;  %s235_s1 = inlined_call_operand.vmem [shape: f32[1,128], index: 1, kind: input, shape index: {}]   ;;  %s236_s2 = inlined_call_operand.hbm [shape: f32[8,128], index: 2, kind: output, shape index: {}]  }
   0x1   :  { %8 = vsyncpa [#allocation4], 0 }
   0x2   :  { %17 = vsyncadd [#allocation3], 112  ;;  %s188_s9 = smov [#allocation2]   ;;  %s140_s13 = scalar_lea.hbm %s234_s0, 16 }
   0x3   :  { %s21_s10 = sshll.u32 %s188_s9, 4  ;;  %p141_p0 = scmp.ne.s32.totalorder %s234_s0, %s140_s13  ;;  %s22_s10 = int_to_ptr.vmem [resolvable:$true] %s21_s10 }
   0x4   :  { %p144_p1 = scmp.lt.u32.totalorder %s140_s13, %s234_s0 }
   0x6   :  { %p146_p2 = pnand %p144_p1, %p141_p0 }
   0x8   :  { %149 = shalt.err (!%p146_p2)
}
   0x9   :  { %s150_s18 = scalar_lea.vmem %s22_s10, 16  ;;  %s154_s19 = scalar_lea.vmem %s22_s10, 128 }
   0xa   :  { %p151_p3 = scmp.ne.s32.totalorder %s22_s10, %s150_s18  ;;  %p155_p4 = scmp.lt.s32.totalorder %s22_s10, %s22_s10 }
   0xb   :  { %p156_p5 = scmp.lt.s32.totalorder %s154_s19, %s150_s18 }
   0xd   :  { %p157_p6 = por %p156_p5, %p155_p4 }
   0xf   :  { %p158_p7 = pnand %p157_p6, %p151_p3 }
  0x11   :  { %161 = shalt.err (!%p158_p7)
}
  0x12   :  { %s189_s20 = smov 16   ;;  %s190_s21 = smov 1  }
  0x13   :  { %27 = dma.hbm_to_vmem [thread:$0]  %s234_s0, 16, %s22_s10, [#allocation3], %s189_s20, %s189_s20, %s190_s21  }
  0x14   :  { %184 = dma.done.wait [#allocation3], 128  }
  0x15   :  { %185 = vsyncadd [#allocation3], 4294967168  ;;  %v76_v0 = vld [vmem:[#allocation2] sm:$0xff]  ;;  %v101_v16 = vlaneseq  ;;  %s191_s0 = smov [#allocation5]  }
  0x16   :  { %v77_v1 = vld [vmem:[%s235_s1] sm:$0xff]  ;;  %s119_s1 = sshll.u32 %s191_s0, 4  ;;  %s120_s1 = int_to_ptr.vmem [resolvable:$true] %s119_s1 }
  0x17   :  { %vm78_vm0 = vcmp.lt.f32.partialorder %v77_v1, 1.0  ;;  %v79_v2 = vmul.f32 -15.0, %v77_v1  ;;  %v87_v3 = vmul.f32 %v77_v1, %v76_v0  ;;  %v102_v20 = vshrl.u32 %v101_v16, 7  ;;  %s162_s26 = scalar_lea.vmem %s120_s1, 128  ;;  %p167_p9 = scmp.lt.s32.totalorder %s120_s1, %s120_s1 }
  0x18   :  { %v104_v22 = vand.u32 127, %v101_v16  ;;  %p163_p8 = scmp.ne.s32.totalorder %s120_s1, %s162_s26  ;;  %p168_p10 = scmp.lt.s32.totalorder %s162_s26, %s162_s26 }
  0x19   :  { %v80_v4 = vsel %vm78_vm0, %v79_v2, %v77_v1  ;;  %v88_v5 = vsub.f32 1.0, %v87_v3  ;;  %v92_v8 = vmul.f32 -4.0, %v87_v3  ;;  %vm90_vm2 = vcmp.gt.f32.partialorder %v87_v3, -1.0 }
  0x1a   :  { %vm81_vm1 = vcmp.eq.f32.partialorder %v80_v4, 1.0  ;;  %v82_v6 = vmul.f32 0.3, %v80_v4  ;;  %v105_v23 = vmul.u32 128, %v102_v20  ;;  %p169_p11 = por %p168_p10, %p167_p9 }
  0x1b   :  { %v89_v7 = vmax.f32 %v88_v5, 0.0 }
  0x1c   :  { %v83_v9 = vsel %vm81_vm1, %v82_v6, %v80_v4  ;;  %v106_v24 = vadd.s32 %v105_v23, %v104_v22  ;;  %p170_p12 = pnand %p169_p11, %p163_p8 }
  0x1d   :  { %vm84_vm3 = vcmp.gt.f32.partialorder %v83_v9, 1.0  ;;  %v85_v10 = vmul.f32 0.7, %v83_v9  ;;  %v91_v11 = vmul.f32 %v89_v7, %v89_v7 }
  0x1e   :  { %vm107_vm4 = vcmp.lt.s32.totalorder %v106_v24, 32 }
  0x1f   :  { %v86_v12 = vsel %vm84_vm3, %v85_v10, %v83_v9  ;;  %v93_v13 = vsel %vm90_vm2, %v91_v11, %v92_v8 }
  0x20   :  { %v94_v14 = vadd.f32 1e-10, %v93_v13 }
  0x22   :  { %v95_v15 = vmul.f32 %v94_v14, %v86_v12 }
  0x24   :  { %136 = vlog2.f32 %v95_v15 }
  0x2e   :  { %v137_v17 = vpop.eup %136 }
  0x2f   :  { %v97_v18 = vmul.f32 0.6931472, %v137_v17 }
  0x31   :  { %v98_v19 = vmul.f32 1.3333334, %v97_v18 }
  0x33   :  { %v99_v21 = vmul.f32 1.442695, %v98_v19 }
  0x35   :  { %138 = vpow2.f32 %v99_v21 }
  0x3f   :  { %v139_v25 = vpop.eup %138 }
  0x40   :  { %v108_v26 = vsel %vm107_vm4, %v139_v25, 0.0 }
  0x41   :  { %112 = vst [vmem:[#allocation5] sm:$0xff] %v108_v26 }
  0x42   :  { %173 = shalt.err (!%p170_p12)
}
  0x43   :  { %s174_s29 = scalar_lea.hbm %s236_s2, 128 }
  0x44   :  { %p175_p13 = scmp.ne.s32.totalorder %s236_s2, %s174_s29  ;;  %p178_p0 = scmp.lt.u32.totalorder %s174_s29, %s236_s2 }
  0x46   :  { %p180_p1 = pnand %p178_p0, %p175_p13 }
  0x48   :  { %183 = shalt.err (!%p180_p1)
}
  0x49   :  { %122 = dma.vmem_to_hbm [thread:$0]  %s120_s1, 128, %s236_s2, [#allocation4]  }
  0x4a   :  { %186 = dma.done.wait [#allocation4], 128  }
  0x4b   :  { %187 = vsyncadd [#allocation4], 4294967168 }
  0x4c   :  { %126 = vsyncpa [#allocation3], 1 }
  0x4d   :  { %127 = vsyncpa [#allocation4], 1 }

</bundles_post_ra>
